<compile_context>
chip_gen: v6e
topology: v6e:2x2x1
jax: 0.10.0
libtpu: 0.0.40
codegen_flags: <defaults>
</compile_context>

<pallas_src>
import functools
import numpy as np
import jax
import jax.numpy as jnp
from jax.experimental import pallas as pl
from jax.experimental.pallas import tpu as pltpu

EPS = 1e-5  # PyTorch BatchNorm1d default eps


def _round_up(x, m):
    return ((x + m - 1) // m) * m


# --------------------------------------------------------------------------
# Kernel
# --------------------------------------------------------------------------
def _hybrid_first_kernel(x_ref, aff0_ref, wc1_ref, fgn_ref, w2_ref, b2_ref,
                         w3_ref, b3_ref, o_ref, *, h1p):
    # Activations stay f32 (v5e has no bf16 VPU); MXU operands take the weight
    # dtype via .astype below (bf16 on v6e/v7x when requested).
    x = x_ref[...].astype(jnp.float32)

    # ---- BN0 pre-folded to a single affine: x*scale + shift ----
    x = x * aff0_ref[0:1, :] + aff0_ref[1:2, :]

    # ---- row squared norms (XLU) issued before the MXU dot so they overlap ----
    x_sq = jnp.sum(x * x, axis=1, keepdims=True)                  # (tb, 1)

    # ---- FGN layer: single fused [W1 | C1] matmul, split on a 128-lane edge ----
    t = jnp.dot(x.astype(wc1_ref.dtype), wc1_ref[...],
                preferred_element_type=jnp.float32)               # (tb, 2*h1p)
    lin = jnp.tanh(t[:, :h1p] + fgn_ref[0:1, :])                  # tanh(xW1 - (W1*C1).sum)
    dist_sq = x_sq + fgn_ref[1:2, :] - 2.0 * t[:, h1p:]           # ||x - C1||^2
    h = lin * jnp.exp(-dist_sq * fgn_ref[2:3, :])                 # * exp(-d2 / s^2)

    # ---- BN1 folded into (W2, b2); Linear + tanh ----
    h = jnp.tanh(jnp.dot(h.astype(w2_ref.dtype), w2_ref[...],
                         preferred_element_type=jnp.float32) + b2_ref[...])

    # ---- BN2 folded into (W3, b3); final Linear + tanh (un-padded out width) ----
    out = jnp.tanh(jnp.dot(h.astype(w3_ref.dtype), w3_ref[...],
                           preferred_element_type=jnp.float32) + b3_ref[...])

    o_ref[...] = out.astype(o_ref.dtype)


# --------------------------------------------------------------------------
# Parameter folding (done once, wrapper-side)
# --------------------------------------------------------------------------
def _fold_params(params, h1p, h2p, weight_dtype=jnp.float32):
    """Fold BatchNorms / FGN constants into 7 fused kernel inputs.

    Padded columns / rows are zero, so padded hidden units contribute exactly
    0 to downstream layers (tanh(0)=0 and zero W2/W3 rows).
    """
    (g0, b0, m0, v0, w1, c1, s1, g1, b1, m1, v1,
     w2, bb2, g2, b2, m2, v2, w3, bb3) = params
    h1 = w1.shape[1]
    h2 = w2.shape[1]

    def padc(a, width):
        return jnp.pad(a, ((0, 0), (0, width - a.shape[1])))

    # BN0 -> affine, stacked into one (2, in_feats) array
    scale0 = g0 * jax.lax.rsqrt(v0 + EPS)
    shift0 = b0 - m0 * scale0
    aff0 = jnp.concatenate([scale0, shift0], axis=0)

    # FGN constants, padded to h1p; bias/c_sq/inv_s2 stacked into (3, h1p)
    w1p = padc(w1, h1p)
    c1p = padc(c1, h1p)
    wc1 = jnp.concatenate([w1p, c1p], axis=1)                       # (in, 2*h1p)
    bias1 = padc(-jnp.sum(w1 * c1, axis=0, keepdims=True), h1p)     # (1, h1p)
    c_sq = padc(jnp.sum(c1 * c1, axis=0, keepdims=True), h1p)       # (1, h1p)
    inv_s2 = padc(1.0 / (s1 * s1), h1p)                             # (1, h1p)
    fgn = jnp.concatenate([bias1, c_sq, inv_s2], axis=0)            # (3, h1p)

    # BN1 folded into Linear(h1 -> h2), padded to (h1p, h2p)
    scale1 = g1 * jax.lax.rsqrt(v1 + EPS)
    shift1 = b1 - m1 * scale1
    w2f = jnp.pad(w2 * scale1.reshape(-1, 1), ((0, h1p - h1), (0, h2p - h2)))
    b2f = padc(shift1 @ w2 + bb2, h2p)

    # BN2 folded into Linear(h2 -> out): rows padded to h2p, lanes NOT padded
    scale2 = g2 * jax.lax.rsqrt(v2 + EPS)
    shift2 = b2 - m2 * scale2
    w3f = jnp.pad(w3 * scale2.reshape(-1, 1), ((0, h2p - h2), (0, 0)))
    b3f = shift2 @ w3 + bb3

    wd = weight_dtype
    return (aff0, wc1.astype(wd), fgn, w2f.astype(wd), b2f,
            w3f.astype(wd), b3f)


# --------------------------------------------------------------------------
# Tiling heuristics (chip-aware)
# --------------------------------------------------------------------------
def _vmem_capacity_bytes():
    try:
        return int(pltpu.get_tpu_info().vmem_capacity_bytes)
    except Exception:
        return 64 << 20   # conservative fallback: v7x per-TensorCore VMEM


def _pick_tile_rows(rows, in_feats, out_feats, h1p, h2p, budget_bytes,
                    x_itemsize):
    """VMEM-aware tile choice: multiple of 8, <=4096 rows, >= ~8 grid steps."""
    # per-row VMEM footprint: double-buffered in/out tiles + intermediate
    # activations (t, h, out) with ~2x headroom
    per_row = (2 * x_itemsize * in_feats
               + 2 * 4 * out_feats
               + 2 * 4 * (3 * h1p + h2p + out_feats))
    cap = budget_bytes // max(per_row, 1)
    cap = max(8, min(4096, (cap // 8) * 8))
    # aim for >= 8 grid steps (>= 4 per TensorCore on v7x) when rows allow
    target = _round_up(max(-(-rows // 8), 8), 8)
    return int(min(cap, target))


# --------------------------------------------------------------------------
# Public wrapper
# --------------------------------------------------------------------------
def feedforward_hybrid_first(x, params, *, in_feats, out_feats, hidden_l_nums,
                             tile_rows=None, weight_dtype=jnp.float32,
                             x_dtype=jnp.float32):
    """Fused forward pass as one Pallas call, tiled over the flattened batch.

    weight_dtype / x_dtype = jnp.bfloat16 halves parameter and input HBM
    traffic on v6e/v7x (f32 accumulation is kept); use a looser tolerance
    (~1e-2) when validating that path.
    """
    h1, h2 = hidden_l_nums
    h1p = _round_up(max(h1, 1), 128)
    h2p = _round_up(max(h2, 1), 128)

    x2d = x.reshape(-1, in_feats).astype(x_dtype)
    rows = x2d.shape[0]
    x_itemsize = np.dtype(x_dtype).itemsize

    fused = _fold_params(params, h1p, h2p, weight_dtype)

    cap = _vmem_capacity_bytes()
    budget = max(8 << 20, min(cap // 2, 48 << 20))        # working-set target
    vmem_limit = int(min(cap * 3 // 4, 96 << 20))         # scoped VMEM limit

    if tile_rows is None:
        tile_rows = _pick_tile_rows(rows, in_feats, out_feats, h1p, h2p,
                                    budget, x_itemsize)
    tile_rows = max(8, _round_up(int(tile_rows), 8))

    # Pad rows so the grid divides evenly; keep the step count even so both
    # v7x TensorCores get equal work.
    rows_padded = _round_up(rows, tile_rows)
    grid_steps = rows_padded // tile_rows
    if grid_steps > 1 and grid_steps % 2 == 1:
        rows_padded += tile_rows
        grid_steps += 1
    if rows_padded > rows:
        x2d = jnp.pad(x2d, ((0, rows_padded - rows), (0, 0)))

    row_map = lambda i: (i, 0)     # tiles over the flattened batch dimension
    full_map = lambda i: (0, 0)    # parameters: one resident full-array block

    in_specs = [pl.BlockSpec((tile_rows, in_feats), row_map)]
    in_specs += [pl.BlockSpec(p.shape, full_map) for p in fused]

    param_bytes = sum(int(np.prod(p.shape)) * p.dtype.itemsize for p in fused)
    cost = pl.CostEstimate(
        flops=int(2 * rows_padded * (in_feats * 2 * h1p + h1p * h2p
                                     + h2p * out_feats)),
        transcendentals=int(rows_padded * (2 * h1p + h2p + out_feats)),
        bytes_accessed=int(rows_padded * in_feats * x_itemsize
                           + rows_padded * out_feats * 4 + param_bytes))

    out = pl.pallas_call(
        functools.partial(_hybrid_first_kernel, h1p=h1p),
        out_shape=jax.ShapeDtypeStruct((rows_padded, out_feats), jnp.float32),
        grid_spec=pltpu.PrefetchScalarGridSpec(
            num_scalar_prefetch=0,
            grid=(grid_steps,),
            in_specs=in_specs,
            out_specs=pl.BlockSpec((tile_rows, out_feats), row_map),
        ),
        compiler_params=pltpu.CompilerParams(
            dimension_semantics=("parallel",),
            vmem_limit_bytes=vmem_limit),
        cost_estimate=cost,
    )(x2d, *fused)

    return out[:rows] if rows_padded > rows else out


# --------------------------------------------------------------------------
# Synthetic parameters & pure-JAX reference (unfolded math)
# --------------------------------------------------------------------------
def init_params(key, in_feats, hidden_l_nums, out_feats):
    """Deterministic synthetic parameters (shapes per the module __init__).
    Weight matrices are stored transposed vs PyTorch, i.e. (in, out)."""
    h1, h2 = hidden_l_nums
    ks = jax.random.split(key, 19)

    def u(k, shape, lo, hi):
        return jax.random.uniform(k, shape, jnp.float32, lo, hi)

    # input BatchNorm1d(in_feats): gamma, beta, running_mean, running_var
    g0 = u(ks[0], (1, in_feats), 0.5, 1.5)
    b0 = u(ks[1], (1, in_feats), -0.1, 0.1)
    m0 = u(ks[2], (1, in_feats), -0.5, 0.5)
    v0 = u(ks[3], (1, in_feats), 0.5, 1.5)
    # FGN_layer(in_feats, h1): weights, centers, sizes
    lim1 = 1.0 / np.sqrt(in_feats)
    w1 = u(ks[4], (in_feats, h1), -lim1, lim1)
    c1 = u(ks[5], (in_feats, h1), -0.5, 0.5)
    s1 = u(ks[6], (1, h1), 1.0, 2.0)
    # BatchNorm1d(h1)
    g1 = u(ks[7], (1, h1), 0.5, 1.5)
    b1 = u(ks[8], (1, h1), -0.1, 0.1)
    m1 = u(ks[9], (1, h1), -0.5, 0.5)
    v1 = u(ks[10], (1, h1), 0.5, 1.5)
    # nn.Linear(h1, h2)
    lim2 = 1.0 / np.sqrt(h1)
    w2 = u(ks[11], (h1, h2), -lim2, lim2)
    bb2 = u(ks[12], (1, h2), -lim2, lim2)
    # BatchNorm1d(h2)
    g2 = u(ks[13], (1, h2), 0.5, 1.5)
    b2 = u(ks[14], (1, h2), -0.1, 0.1)
    m2 = u(ks[15], (1, h2), -0.5, 0.5)
    v2 = u(ks[16], (1, h2), 0.5, 1.5)
    # final nn.Linear(h2, out_feats)
    lim3 = 1.0 / np.sqrt(h2)
    w3 = u(ks[17], (h2, out_feats), -lim3, lim3)
    bb3 = u(ks[18], (1, out_feats), -lim3, lim3)

    return (g0, b0, m0, v0, w1, c1, s1, g1, b1, m1, v1,
            w2, bb2, g2, b2, m2, v2, w3, bb3)


def reference_forward(x, params, *, in_feats):
    """Pure-JAX reference with UNFOLDED math (validates the kernel's fusions)."""
    (g0, b0, m0, v0, w1, c1, s1, g1, b1, m1, v1,
     w2, bb2, g2, b2, m2, v2, w3, bb3) = params
    h = x.reshape(-1, in_feats).astype(jnp.float32)
    h = (h - m0) * jax.lax.rsqrt(v0 + EPS) * g0 + b0
    bias1 = -jnp.sum(w1 * c1, axis=0, keepdims=True)
    lin = jnp.tanh(h @ w1 + bias1)
    d2 = (jnp.sum(h * h, axis=1, keepdims=True)
          + jnp.sum(c1 * c1, axis=0, keepdims=True) - 2.0 * (h @ c1))
    h = lin * jnp.exp(-d2 / (s1 * s1))
    h = (h - m1) * jax.lax.rsqrt(v1 + EPS) * g1 + b1
    h = jnp.tanh(h @ w2 + bb2)
    h = (h - m2) * jax.lax.rsqrt(v2 + EPS) * g2 + b2
    return jnp.tanh(h @ w3 + bb3)


if __name__ == "__main__":
    # Module configuration (small, synthetic)
    in_feats = 16
    hidden_l_nums = [32, 64]
    out_feats = 8

    key = jax.random.PRNGKey(0)
    kx, kp = jax.random.split(key)

    # NCHW-style input; forward flattens it to (-1, in_feats): (128, 16)
    x = jax.random.normal(kx, (2, 4, 16, 16), dtype=jnp.float32)
    params = init_params(kp, in_feats, hidden_l_nums, out_feats)

    ref = reference_forward(x, params, in_feats=in_feats)

    # --- f32 path (tight check) ---
    out = feedforward_hybrid_first(
        x, params, in_feats=in_feats, out_feats=out_feats,
        hidden_l_nums=hidden_l_nums)
    out = jax.block_until_ready(out)
    assert out.shape == (128, out_feats)
    np.testing.assert_allclose(np.asarray(out), np.asarray(ref),
                               rtol=5e-5, atol=5e-5)

    # --- bf16 weight / input path (v6e/v7x fast path; loose sanity check) ---
    out_bf16 = feedforward_hybrid_first(
        x, params, in_feats=in_feats, out_feats=out_feats,
        hidden_l_nums=hidden_l_nums,
        weight_dtype=jnp.bfloat16, x_dtype=jnp.bfloat16)
    out_bf16 = jax.block_until_ready(out_bf16)
    assert out_bf16.shape == (128, out_feats)
    assert np.all(np.isfinite(np.asarray(out_bf16)))
    np.testing.assert_allclose(np.asarray(out_bf16), np.asarray(ref),
                               rtol=0.0, atol=1e-1)  # bf16 MXU operands

    print("KERNEL_OK")
</pallas_src>

<mosaic_0001>
module attributes {stable_mosaic.version = 11 : i64} {
  func.func @_hybrid_first_kernel(%arg0: i32, %arg1: memref<16x16xf32, #tpu.memory_space<vmem>>, %arg2: memref<2x16xf32, #tpu.memory_space<vmem>>, %arg3: memref<16x256xf32, #tpu.memory_space<vmem>>, %arg4: memref<3x128xf32, #tpu.memory_space<vmem>>, %arg5: memref<128x128xf32, #tpu.memory_space<vmem>>, %arg6: memref<1x128xf32, #tpu.memory_space<vmem>>, %arg7: memref<128x8xf32, #tpu.memory_space<vmem>>, %arg8: memref<1x8xf32, #tpu.memory_space<vmem>>, %arg9: memref<16x8xf32, #tpu.memory_space<vmem>>) attributes {dimension_semantics = [#tpu.dimension_semantics<parallel>], iteration_bounds = array<i64: 8>, scalar_prefetch = 0 : i64, scratch_operands = 0 : i64, tpu.core_type = #tpu.core_type<tc>, window_params = [{transform_indices = @transform_0, window_bounds = array<i64: 16, 16>}, {pipeline_mode = #tpu.pipeline_mode<synchronous>, transform_indices = @transform_1, window_bounds = array<i64: 2, 16>}, {pipeline_mode = #tpu.pipeline_mode<synchronous>, transform_indices = @transform_2, window_bounds = array<i64: 16, 256>}, {pipeline_mode = #tpu.pipeline_mode<synchronous>, transform_indices = @transform_3, window_bounds = array<i64: 3, 128>}, {pipeline_mode = #tpu.pipeline_mode<synchronous>, transform_indices = @transform_4, window_bounds = array<i64: 128, 128>}, {pipeline_mode = #tpu.pipeline_mode<synchronous>, transform_indices = @transform_5, window_bounds = array<i64: 1, 128>}, {pipeline_mode = #tpu.pipeline_mode<synchronous>, transform_indices = @transform_6, window_bounds = array<i64: 128, 8>}, {pipeline_mode = #tpu.pipeline_mode<synchronous>, transform_indices = @transform_7, window_bounds = array<i64: 1, 8>}, {transform_indices = @transform_8, window_bounds = array<i64: 16, 8>}]} {
    %c0 = arith.constant 0 : index
    %c0_0 = arith.constant 0 : index
    %0 = vector.load %arg1[%c0, %c0_0] : memref<16x16xf32, #tpu.memory_space<vmem>>, vector<16x16xf32>
    %c0_1 = arith.constant 0 : index
    %c0_2 = arith.constant 0 : index
    %1 = vector.load %arg2[%c0_1, %c0_2] : memref<2x16xf32, #tpu.memory_space<vmem>>, vector<1x16xf32>
    %2 = vector.broadcast %1 : vector<1x16xf32> to vector<16x16xf32>
    %3 = arith.mulf %0, %2 : vector<16x16xf32>
    %c1 = arith.constant 1 : index
    %c0_3 = arith.constant 0 : index
    %4 = vector.load %arg2[%c1, %c0_3] : memref<2x16xf32, #tpu.memory_space<vmem>>, vector<1x16xf32>
    %5 = vector.broadcast %4 : vector<1x16xf32> to vector<16x16xf32>
    %6 = arith.addf %3, %5 : vector<16x16xf32>
    %7 = arith.mulf %6, %6 : vector<16x16xf32>
    %cst = arith.constant dense<0.000000e+00> : vector<16xf32>
    %8 = vector.multi_reduction <add>, %7, %cst [1] : vector<16x16xf32> to vector<16xf32>
    %9 = vector.shape_cast %8 : vector<16xf32> to vector<16x1xf32>
    %c0_4 = arith.constant 0 : index
    %c0_5 = arith.constant 0 : index
    %10 = vector.load %arg3[%c0_4, %c0_5] : memref<16x256xf32, #tpu.memory_space<vmem>>, vector<16x256xf32>
    %cst_6 = arith.constant dense<0.000000e+00> : vector<16x256xf32>
    %11 = tpu.matmul %6, %10, %cst_6 {dimension_numbers = #tpu.dot_dimension_numbers<[1], [0], [0], [1], [0, 0, 1, 1], [], []>} : vector<16x16xf32>, vector<16x256xf32>, vector<16x256xf32> -> vector<16x256xf32>
    %12 = vector.extract_strided_slice %11 {offsets = [0, 0], sizes = [16, 128], strides = [1, 1]} : vector<16x256xf32> to vector<16x128xf32>
    %c0_7 = arith.constant 0 : index
    %c0_8 = arith.constant 0 : index
    %13 = vector.load %arg4[%c0_7, %c0_8] : memref<3x128xf32, #tpu.memory_space<vmem>>, vector<1x128xf32>
    %14 = vector.broadcast %13 : vector<1x128xf32> to vector<16x128xf32>
    %15 = arith.addf %12, %14 : vector<16x128xf32>
    %16 = math.tanh %15 : vector<16x128xf32>
    %c1_9 = arith.constant 1 : index
    %c0_10 = arith.constant 0 : index
    %17 = vector.load %arg4[%c1_9, %c0_10] : memref<3x128xf32, #tpu.memory_space<vmem>>, vector<1x128xf32>
    %18 = vector.broadcast %9 : vector<16x1xf32> to vector<16x128xf32>
    %19 = vector.broadcast %17 : vector<1x128xf32> to vector<16x128xf32>
    %20 = arith.addf %18, %19 : vector<16x128xf32>
    %21 = vector.extract_strided_slice %11 {offsets = [0, 128], sizes = [16, 128], strides = [1, 1]} : vector<16x256xf32> to vector<16x128xf32>
    %cst_11 = arith.constant 2.000000e+00 : f32
    %22 = vector.broadcast %cst_11 : f32 to vector<16x128xf32>
    %23 = arith.mulf %22, %21 : vector<16x128xf32>
    %24 = arith.subf %20, %23 : vector<16x128xf32>
    %cst_12 = arith.constant 0.000000e+00 : f32
    %25 = vector.broadcast %cst_12 : f32 to vector<16x128xf32>
    %26 = arith.subf %25, %24 : vector<16x128xf32>
    %c2 = arith.constant 2 : index
    %c0_13 = arith.constant 0 : index
    %27 = vector.load %arg4[%c2, %c0_13] : memref<3x128xf32, #tpu.memory_space<vmem>>, vector<1x128xf32>
    %28 = vector.broadcast %27 : vector<1x128xf32> to vector<16x128xf32>
    %29 = arith.mulf %26, %28 : vector<16x128xf32>
    %30 = math.exp %29 : vector<16x128xf32>
    %31 = arith.mulf %16, %30 : vector<16x128xf32>
    %c0_14 = arith.constant 0 : index
    %c0_15 = arith.constant 0 : index
    %32 = vector.load %arg5[%c0_14, %c0_15] : memref<128x128xf32, #tpu.memory_space<vmem>>, vector<128x128xf32>
    %cst_16 = arith.constant dense<0.000000e+00> : vector<16x128xf32>
    %33 = tpu.matmul %31, %32, %cst_16 {dimension_numbers = #tpu.dot_dimension_numbers<[1], [0], [0], [1], [0, 0, 1, 1], [], []>} : vector<16x128xf32>, vector<128x128xf32>, vector<16x128xf32> -> vector<16x128xf32>
    %c0_17 = arith.constant 0 : index
    %c0_18 = arith.constant 0 : index
    %34 = vector.load %arg6[%c0_17, %c0_18] : memref<1x128xf32, #tpu.memory_space<vmem>>, vector<1x128xf32>
    %35 = vector.broadcast %34 : vector<1x128xf32> to vector<16x128xf32>
    %36 = arith.addf %33, %35 : vector<16x128xf32>
    %37 = math.tanh %36 : vector<16x128xf32>
    %c0_19 = arith.constant 0 : index
    %c0_20 = arith.constant 0 : index
    %38 = vector.load %arg7[%c0_19, %c0_20] : memref<128x8xf32, #tpu.memory_space<vmem>>, vector<128x8xf32>
    %cst_21 = arith.constant dense<0.000000e+00> : vector<16x8xf32>
    %39 = tpu.matmul %37, %38, %cst_21 {dimension_numbers = #tpu.dot_dimension_numbers<[1], [0], [0], [1], [0, 0, 1, 1], [], []>} : vector<16x128xf32>, vector<128x8xf32>, vector<16x8xf32> -> vector<16x8xf32>
    %c0_22 = arith.constant 0 : index
    %c0_23 = arith.constant 0 : index
    %40 = vector.load %arg8[%c0_22, %c0_23] : memref<1x8xf32, #tpu.memory_space<vmem>>, vector<1x8xf32>
    %41 = vector.broadcast %40 : vector<1x8xf32> to vector<16x8xf32>
    %42 = arith.addf %39, %41 : vector<16x8xf32>
    %43 = math.tanh %42 : vector<16x8xf32>
    %c0_24 = arith.constant 0 : index
    %c0_25 = arith.constant 0 : index
    %44 = vector.load %arg9[%c0_24, %c0_25] : memref<16x8xf32, #tpu.memory_space<vmem>>, vector<16x8xf32>
    tpu.vector_store %arg9[%c0_24, %c0_25], %43 {strides = array<i32>} : memref<16x8xf32, #tpu.memory_space<vmem>>, vector<16x8xf32>,
    return
  }
  func.func @transform_0(%arg0: i32) -> (i32, i32) {
    %c0_i32 = arith.constant 0 : i32
    %c0_i32_0 = arith.constant 0 : i32
    return %arg0, %c0_i32 : i32, i32
  }
  func.func @transform_1(%arg0: i32) -> (i32, i32) {
    %c0_i32 = arith.constant 0 : i32
    %c0_i32_0 = arith.constant 0 : i32
    %c0_i32_1 = arith.constant 0 : i32
    return %c0_i32, %c0_i32_0 : i32, i32
  }
  func.func @transform_2(%arg0: i32) -> (i32, i32) {
    %c0_i32 = arith.constant 0 : i32
    %c0_i32_0 = arith.constant 0 : i32
    %c0_i32_1 = arith.constant 0 : i32
    return %c0_i32, %c0_i32_0 : i32, i32
  }
  func.func @transform_3(%arg0: i32) -> (i32, i32) {
    %c0_i32 = arith.constant 0 : i32
    %c0_i32_0 = arith.constant 0 : i32
    %c0_i32_1 = arith.constant 0 : i32
    return %c0_i32, %c0_i32_0 : i32, i32
  }
  func.func @transform_4(%arg0: i32) -> (i32, i32) {
    %c0_i32 = arith.constant 0 : i32
    %c0_i32_0 = arith.constant 0 : i32
    %c0_i32_1 = arith.constant 0 : i32
    return %c0_i32, %c0_i32_0 : i32, i32
  }
  func.func @transform_5(%arg0: i32) -> (i32, i32) {
    %c0_i32 = arith.constant 0 : i32
    %c0_i32_0 = arith.constant 0 : i32
    %c0_i32_1 = arith.constant 0 : i32
    return %c0_i32, %c0_i32_0 : i32, i32
  }
  func.func @transform_6(%arg0: i32) -> (i32, i32) {
    %c0_i32 = arith.constant 0 : i32
    %c0_i32_0 = arith.constant 0 : i32
    %c0_i32_1 = arith.constant 0 : i32
    return %c0_i32, %c0_i32_0 : i32, i32
  }
  func.func @transform_7(%arg0: i32) -> (i32, i32) {
    %c0_i32 = arith.constant 0 : i32
    %c0_i32_0 = arith.constant 0 : i32
    %c0_i32_1 = arith.constant 0 : i32
    return %c0_i32, %c0_i32_0 : i32, i32
  }
  func.func @transform_8(%arg0: i32) -> (i32, i32) {
    %c0_i32 = arith.constant 0 : i32
    %c0_i32_0 = arith.constant 0 : i32
    return %arg0, %c0_i32 : i32, i32
  }
}

</mosaic_0001>

<bundles_post_ra>
// kernel: tpu_custom_call.1
= control target key start
LH: loop header
LB: loop body
LE: loop exit
PB: predicated region body
PF: predicated region fallthrough
CT: control target
= control target key end

     0   :  { %s920_s27 = smov 0   ;;  %s1073_s0 = inlined_call_operand.vmem [shape: f32[128,16], index: 0, kind: input, shape index: {}]   ;;  %s1074_s1 = inlined_call_operand.vmem [shape: f32[2,16], index: 1, kind: input, shape index: {}]   ;;  %s1075_s2 = inlined_call_operand.vmem [shape: f32[16,256], index: 2, kind: input, shape index: {}]   ;;  %s1076_s3 = inlined_call_operand.vmem [shape: f32[3,128], index: 3, kind: input, shape index: {}]   ;;  %s1077_s4 = inlined_call_operand.vmem [shape: f32[128,128], index: 4, kind: input, shape index: {}]   ;;  %s1078_s5 = inlined_call_operand.vmem [shape: f32[1,128], index: 5, kind: input, shape index: {}]   ;;  %s1079_s6 = inlined_call_operand.vmem [shape: f32[128,8], index: 6, kind: input, shape index: {}]   ;;  %s1080_s7 = inlined_call_operand.vmem [shape: f32[1,8], index: 7, kind: input, shape index: {}]   ;;  %s1081_s8 = inlined_call_operand.vmem [shape: f32[128,8], index: 8, kind: output, shape index: {}]  }
   0x1 LB: > { %s715_s28 = sadd.s32 4294967295, %s872_s27   ;;  %p719_p0 = scmp.ge.s32.totalorder %s872_s27, 1  ;;  %s872_s27 = sphi %s920_s27, %s18_s27  }
   0x2   : > { %p263_p1 = scmp.lt.s32.totalorder %s872_s27, 9 }
   0x4   : > { %p264_p2 = pnand %p719_p0, %p263_p1 }
   0x5   : > { %s720_s13 = sshll.u32 (!%p264_p2), %s715_s28, 1 }
   0x6   : > { %267 = sbr.rel (%p264_p2) target bundleno = 668 (0x29c), region = 52  ;;  %p298_p3 = scmp.lt.s32.totalorder (!%p264_p2), %s720_s13, 15 }
   0xb   : > { %v337_v0 = vld [vmem:[%s1075_s2 + $0x18] sm:$0xff]  ;;  %v336_v1 = vld [vmem:[%s1075_s2 + $0x10] sm:$0xff]  ;;  %v335_v2 = vld [vmem:[%s1075_s2 + $0x8] sm:$0xff]  ;;  %v874_v4 = vmov 0.0   ;;  %s1083_s13 = smov (!%p298_p3, %s720_s13), 15  ;;  %vm327_vm0 = vcmask 130048  }
   0xc   : > { %372 = vmatprep.subr.mxu0 %v337_v0  ;;  %v334_v3 = vld [vmem:[%s1075_s2] sm:$0xff]  ;;  %408 = vmatprep.mubr.f32.mxu0 %v874_v4  ;;  %s721_s16 = sshll.u32 %s1083_s13, 3  ;;  %v471_v17 = vld [vmem:[%s1077_s4 + $0x78] sm:$0xff]  ;;  %v470_v18 = vld [vmem:[%s1077_s4 + $0x70] sm:$0xff]  ;;  %vm656_vm1 = vcmask 64512  }
   0xd   : > { %373 = vmatpush1.msra.mxu0 %v336_v1  ;;  %v724_v5 = vld [vmem:[%s1074_s1] ss:$0 sm:$0xff]  ;;  %s301_s21 = scalar_lea.vmem %s1073_s0, %s721_s16  ;;  %v725_v7 = vld [vmem:[%s1074_s1 + $0x1] ss:$0 sm:$0xff]  ;;  %771 = vmatprep.subr.mxu1 %v471_v17  ;;  %v469_v19 = vld [vmem:[%s1077_s4 + $0x68] sm:$0xff]  ;;  %s307_s24 = scalar_lea.vmem %s1081_s8, %s721_s16 }
   0xe   : > { %374 = vmatprep.subr.mxu0 %v335_v2  ;;  %v309_v6 = vld [vmem:[%s301_s21] sm:$0xff]  ;;  %v310_v8 = vld [vmem:[%s301_s21 + $0x8] sm:$0xff]  ;;  %772 = vmatpush3.msra.mxu1 %v471_v17  ;;  %v467_v21 = vld [vmem:[%s1077_s4 + $0x58] sm:$0xff] }
   0xf   : > { %375 = vmatpush1.msra.mxu0 %v334_v3  ;;  %v316_v9 = vmul.f32 %v724_v5, %v309_v6  ;;  %v317_v10 = vmul.f32 %v724_v5, %v310_v8  ;;  %773 = vmatprep.subr.mxu1 %v470_v18  ;;  %v468_v20 = vld [vmem:[%s1077_s4 + $0x60] sm:$0xff]  ;;  %v466_v22 = vld [vmem:[%s1077_s4 + $0x50] sm:$0xff]  ;;  %v465_v23 = vld [vmem:[%s1077_s4 + $0x48] sm:$0xff] }
  0x10   : > { %774 = vmatpush3.msra.mxu1 %v470_v18  ;;  %v464_v24 = vld [vmem:[%s1077_s4 + $0x40] sm:$0xff]  ;;  %v463_v25 = vld [vmem:[%s1077_s4 + $0x38] sm:$0xff]  ;;  %v462_v26 = vld [vmem:[%s1077_s4 + $0x30] sm:$0xff] }
  0x11   : > { %v323_v11 = vadd.f32 %v725_v7, %v316_v9  ;;  %v324_v12 = vadd.f32 %v725_v7, %v317_v10  ;;  %775 = vmatprep.subr.mxu1 %v469_v19  ;;  %v461_v27 = vld [vmem:[%s1077_s4 + $0x28] sm:$0xff]  ;;  %v460_v28 = vld [vmem:[%s1077_s4 + $0x20] sm:$0xff]  ;;  %v459_v29 = vld [vmem:[%s1077_s4 + $0x18] sm:$0xff] }
  0x12   : > { %776 = vmatpush3.msra.mxu1 %v469_v19  ;;  %v458_v30 = vld [vmem:[%s1077_s4 + $0x10] sm:$0xff]  ;;  %v457_v31 = vld [vmem:[%s1077_s4 + $0x8] sm:$0xff]  ;;  %v456_v32 = vld [vmem:[%s1077_s4] sm:$0xff] }
  0x13   : > { %726 = vmatmul.mubr.msk.f32.vlgmr.msra.gmra.mxu0 %vm327_vm0, %v323_v11  ;;  %v325_v13 = vmul.f32 %v323_v11, %v323_v11  ;;  %v326_v14 = vmul.f32 %v324_v12, %v324_v12  ;;  %777 = vmatprep.subr.mxu1 %v468_v20  ;;  %v571_v33 = vld [vmem:[%s1079_s6 + $0x78] sm:$0xff]  ;;  %v570_v34 = vld [vmem:[%s1079_s6 + $0x70] sm:$0xff]  ;;  %v569_v35 = vld [vmem:[%s1079_s6 + $0x68] sm:$0xff] }
  0x14   : > { %414 = vmatprep.mubr.f32.mxu0 %v874_v4  ;;  %778 = vmatpush3.msra.mxu1 %v468_v20  ;;  %v568_v36 = vld [vmem:[%s1079_s6 + $0x60] sm:$0xff]  ;;  %v567_v37 = vld [vmem:[%s1079_s6 + $0x58] sm:$0xff]  ;;  %v566_v38 = vld [vmem:[%s1079_s6 + $0x50] sm:$0xff] }
  0x15   : > { %v328_v15 = vsel %vm327_vm0, %v325_v13, 0.0  ;;  %v331_v16 = vsel %vm327_vm0, %v326_v14, 0.0  ;;  %779 = vmatprep.subr.mxu1 %v467_v21  ;;  %806 = vmatprep.subr.mxu0 %v571_v33  ;;  %v729_v40 = vld [vmem:[%s1076_s3 + $0x1] ss:$0 sm:$0xff]  ;;  %v728_v47 = vld [vmem:[%s1076_s3] ss:$0 sm:$0xff] }
  0x16   : > { %329 = vadd.xlane.f32.xlu0 %v328_v15  ;;  %780 = vmatpush3.msra.mxu1 %v467_v21  ;;  %v730_v50 = vld [vmem:[%s1076_s3 + $0x2] ss:$0 sm:$0xff]  ;;  %v565_v4 = vld [vmem:[%s1079_s6 + $0x48] sm:$0xff]  ;;  %v563_v6 = vld [vmem:[%s1079_s6 + $0x38] sm:$0xff] }
  0x17   : > { %727 = vmatmul.mubr.msk.f32.gmra.mxu0 %vm327_vm0, %v324_v12  ;;  %781 = vmatprep.subr.mxu1 %v466_v22  ;;  %v564_v5 = vld [vmem:[%s1079_s6 + $0x40] sm:$0xff]  ;;  %v562_v7 = vld [vmem:[%s1079_s6 + $0x30] sm:$0xff]  ;;  %v561_v8 = vld [vmem:[%s1079_s6 + $0x28] sm:$0xff] }
  0x18   : > { %782 = vmatpush3.msra.mxu1 %v466_v22  ;;  %807 = vmatpush3.msra.mxu0 %v571_v33  ;;  %v560_v9 = vld [vmem:[%s1079_s6 + $0x20] sm:$0xff]  ;;  %v559_v10 = vld [vmem:[%s1079_s6 + $0x18] sm:$0xff]  ;;  %v558_v11 = vld [vmem:[%s1079_s6 + $0x10] sm:$0xff] }
  0x19   : > { %783 = vmatprep.subr.mxu1 %v465_v23  ;;  %808 = vmatprep.subr.mxu0 %v570_v34  ;;  %v557_v12 = vld [vmem:[%s1079_s6 + $0x8] sm:$0xff]  ;;  %v556_v13 = vld [vmem:[%s1079_s6] sm:$0xff] }
  0x1a   : > { %332 = vadd.xlane.f32.xlu0 %v331_v16  ;;  %784 = vmatpush3.msra.mxu1 %v465_v23  ;;  %v731_v14 = vld [vmem:[%s1078_s5] ss:$0 sm:$0xff] }
  0x1b   : > { %785 = vmatprep.subr.mxu1 %v464_v24  ;;  %809 = vmatpush3.msra.mxu0 %v570_v34  ;;  %v732_v21 = vld [vmem:[%s1080_s7] ss:$0 sm:$0xff] }
  0x1c   : > { %786 = vmatpush3.msra.mxu1 %v464_v24  ;;  %810 = vmatprep.subr.mxu0 %v569_v35 }
  0x1d   : > { %787 = vmatprep.subr.mxu1 %v463_v25  ;;  %811 = vmatpush3.msra.mxu0 %v569_v35 }
  0x1e   : > { %788 = vmatpush3.msra.mxu1 %v463_v25  ;;  %812 = vmatprep.subr.mxu0 %v568_v36 }
  0x1f   : > { %789 = vmatprep.subr.mxu1 %v462_v26  ;;  %813 = vmatpush3.msra.mxu0 %v568_v36 }
  0x20   : > { %790 = vmatpush3.msra.mxu1 %v462_v26  ;;  %814 = vmatprep.subr.mxu0 %v567_v37 }
  0x21   : > { %791 = vmatprep.subr.mxu1 %v461_v27  ;;  %815 = vmatpush3.msra.mxu0 %v567_v37 }
  0x22   : > { %792 = vmatpush3.msra.mxu1 %v461_v27  ;;  %816 = vmatprep.subr.mxu0 %v566_v38 }
  0x23   : > { %793 = vmatprep.subr.mxu1 %v460_v28  ;;  %817 = vmatpush3.msra.mxu0 %v566_v38 }
  0x24   : > { %794 = vmatpush3.msra.mxu1 %v460_v28  ;;  %818 = vmatprep.subr.mxu0 %v565_v4 }
  0x25   : > { %795 = vmatprep.subr.mxu1 %v459_v29  ;;  %819 = vmatpush3.msra.mxu0 %v565_v4 }
  0x26   : > { %796 = vmatpush3.msra.mxu1 %v459_v29  ;;  %820 = vmatprep.subr.mxu0 %v564_v5 }
  0x27   : > { %797 = vmatprep.subr.mxu1 %v458_v30  ;;  %821 = vmatpush3.msra.mxu0 %v564_v5 }
  0x28   : > { %798 = vmatpush3.msra.mxu1 %v458_v30  ;;  %822 = vmatprep.subr.mxu0 %v563_v6 }
  0x29   : > { %799 = vmatprep.subr.mxu1 %v457_v31  ;;  %823 = vmatpush3.msra.mxu0 %v563_v6 }
  0x2a   : > { %800 = vmatpush3.msra.mxu1 %v457_v31  ;;  %824 = vmatprep.subr.mxu0 %v562_v7 }
  0x2b   : > { %801 = vmatprep.subr.mxu1 %v456_v32  ;;  %825 = vmatpush3.msra.mxu0 %v562_v7 }
  0x2c   : > { %802 = vmatpush3.msra.mxu1 %v456_v32  ;;  %826 = vmatprep.subr.mxu0 %v561_v8 }
  0x2d   : > { %827 = vmatpush3.msra.mxu0 %v561_v8 }
  0x2e   : > { %828 = vmatprep.subr.mxu0 %v560_v9 }
  0x2f   : > { %829 = vmatpush3.msra.mxu0 %v560_v9 }
  0x30   : > { %830 = vmatprep.subr.mxu0 %v559_v10 }
  0x31   : > { %831 = vmatpush3.msra.mxu0 %v559_v10 }
  0x32   : > { %832 = vmatprep.subr.mxu0 %v558_v11 }
  0x33   : > { %833 = vmatpush3.msra.mxu0 %v558_v11 }
  0x34   : > { %834 = vmatprep.subr.mxu0 %v557_v12 }
  0x35   : > { %835 = vmatpush3.msra.mxu0 %v557_v12 }
  0x36   : > { %836 = vmatprep.subr.mxu0 %v556_v13 }
  0x37   : > { %837 = vmatpush3.msra.mxu0 %v556_v13 }
  0x9f   : > { %v330_v39 = vpop.xlane.xlu0 %329 }
  0xa0   : > { %v435_v42 = vadd.f32 %v729_v40, %v330_v39 }
  0xa3   : > { %v333_v44 = vpop.xlane.xlu0 %332 }
  0xa4   : > { %v436_v49 = vadd.f32 %v729_v40, %v333_v44 }
  0xd3   : > { %v410_v41 = vpop.f32.mrf.mxu0 }
  0xd4   : > { %v426_v54 = vadd.f32 %v728_v47, %v410_v41 }
  0xd5   : > { %v412_v43 = vpop.f32.mrf.mxu0 }
  0xd6   : > { %v437_v45 = vmul.f32 2.0, %v412_v43  ;;  %850 = vtanh.f32 %v426_v54 }
  0xd7   : > { %v416_v46 = vpop.f32.mrf.mxu0 }
  0xd8   : > { %v439_v48 = vsub.f32 %v435_v42, %v437_v45  ;;  %v427_v59 = vadd.f32 %v728_v47, %v416_v46 }
  0xd9   : > { %v418_v51 = vpop.f32.mrf.mxu0 }
  0xda   : > { %v441_v52 = vsub.f32 0.0, %v439_v48  ;;  %v438_v53 = vmul.f32 2.0, %v418_v51 }
  0xdc   : > { %v448_v55 = vmul.f32 %v730_v50, %v441_v52  ;;  %v440_v56 = vsub.f32 %v436_v49, %v438_v53 }
  0xde   : > { %v450_v57 = vmul.f32 1.442695, %v448_v55  ;;  %v442_v58 = vsub.f32 0.0, %v440_v56 }
  0xe0   : > { %852 = vpow2.f32 %v450_v57  ;;  %v449_v60 = vmul.f32 %v730_v50, %v442_v58 }
  0xe1   : > { %854 = vtanh.f32 %v427_v59 }
  0xe2   : > { %v452_v61 = vmul.f32 1.442695, %v449_v60 }
  0xe3   : > { %v851_v62 = vpop.eup %850 }
  0xe4   : > { %856 = vpow2.f32 %v452_v61 }
  0xed   : > { %v853_v63 = vpop.eup %852 }
  0xee   : > { %v454_v0 = vmul.f32 %v853_v63, %v851_v62  ;;  %v855_v1 = vpop.eup %854 }
  0xf0   : > { %803 = vmatprep.mubr.f32.mxu1 %v454_v0 }
  0xf1   : > { %v857_v2 = vpop.eup %856 }
  0xf2   : > { %v455_v3 = vmul.f32 %v857_v2, %v855_v1 }
  0xf4   : > { %804 = vmatmul.mubr.f32.vlgmr.msra.gmra.mxu1 %v455_v3 }
 0x1b4   : > { %v805_v15 = vpop.f32.mrf.mxu1 }
 0x1b5   : > { %v551_v16 = vadd.f32 %v805_v15, %v731_v14 }
 0x1b6   : > { %v545_v17 = vpop.f32.mrf.mxu1 }
 0x1b7   : > { %v546_v18 = vadd.f32 %v731_v14, %v545_v17 }
 0x1b9   : > { %858 = vtanh.f32 %v546_v18 }
 0x1ba   : > { %860 = vtanh.f32 %v551_v16 }
 0x1c6   : > { %v859_v19 = vpop.eup %858 }
 0x1c7   : > { %v861_v20 = vpop.eup %860  ;;  %838 = vmatprep.mubr.f32.mxu0 %v859_v19 }
 0x1c8   : > { %839 = vmatmul.mubr.f32.vlgmr.msra.gmra.mxu0 %v861_v20 }
 0x288   : > { %v840_v22 = vpop.f32.mrf.mxu0 }
 0x289   : > { %v651_v23 = vadd.f32 %v840_v22, %v732_v21 }
 0x28a   : > { %v645_v24 = vpop.f32.mrf.mxu0 }
 0x28b   : > { %862 = vtanh.f32 %v651_v23  ;;  %v646_v25 = vadd.f32 %v732_v21, %v645_v24 }
 0x28d   : > { %864 = vtanh.f32 %v646_v25 }
 0x298   : > { %v863_v26 = vpop.eup %862 }
 0x299   : > { %658 = vst.msk [vmem:[%s307_s24 + $0x8] sm:$0xff] %vm656_vm1, %v863_v26 }
 0x29a   : > { %v865_v27 = vpop.eup %864 }
 0x29b   : > { %657 = vst.msk [vmem:[%s307_s24] sm:$0xff] %vm656_vm1, %v865_v27 }
 0x29c PF: > { %s18_s27 = sadd.s32 1, %s872_s27  }
 0x29d   : > { %p15_p4 = scmp.ge.s32.totalorder %s18_s27, 10  }
 0x29f   :  { %17 = sbr.rel (!%p15_p4) target bundleno = 1 (0x1), region = 82 }

</bundles_post_ra>
